<compile_context>
chip_gen: v6e
topology: v6e:2x2x1
jax: 0.10.0
libtpu: 0.0.40
codegen_flags: <defaults>
</compile_context>

<pallas_src>
import functools

import jax
import jax.numpy as jnp
import numpy as np
from scipy import linalg as scipy_linalg

from jax.experimental import pallas as pl
from jax.experimental.pallas import tpu as pltpu


# --------------------------- Pallas kernel ----------------------------------

def _actnorm_invconv_kernel(x_ref, w_ref, b_ref, o_ref):
    # x_ref : (NB, C_in, TS)   lane-dense spatial tile(s)
    # w_ref : (C_out, C_in)    VMEM-resident effective weight (ActNorm folded in)
    # b_ref : (C_out, 1)       VMEM-resident effective bias
    # o_ref : (NB, C_out, TS)
    w = w_ref[...]
    b = b_ref[...]
    for bi in range(x_ref.shape[0]):      # static unroll over the batch sub-block
        acc = jnp.dot(w, x_ref[bi], preferred_element_type=jnp.float32)
        o_ref[bi] = (acc + b).astype(o_ref.dtype)


def _pick_blocks(n, c, s, *, max_lanes=8192, vmem_budget_bytes=16 * 1024 * 1024):
    """Choose (batch_block, spatial_tile): x+out tiles, double-buffered, f32."""
    bytes_per_lane = 2 * 2 * max(c, 1) * 4        # {x,out} x 2 buffers x C rows x 4B
    cap_lanes = max(128, vmem_budget_bytes // bytes_per_lane)
    cap_lanes = min(cap_lanes, max_lanes)
    if s > cap_lanes:
        # Tile the spatial axis; lane-aligned tile, tail block masked by Pallas.
        return 1, max(128, (cap_lanes // 128) * 128)
    # Whole spatial extent fits on the lane axis; process several batch images
    # per grid step to amortize per-step overhead (nb chosen to divide n).
    nb = max(1, min(n, cap_lanes // max(s, 1), 8))
    while n % nb != 0:
        nb -= 1
    return nb, s


def actnorm_invconv(x, loc, scale, weight):
    """Fused ActNorm + invertible 1x1 conv:  conv1x1(scale * (x + loc), weight).

    x      : (N, C, H, W)  NCHW
    loc    : (C,)          ActNorm loc
    scale  : (C,)          ActNorm scale
    weight : (C_out, C_in) 1x1 conv kernel (spatial taps squeezed)
    """
    n, c, h, w = x.shape
    c_out, c_in = weight.shape
    assert c_in == c, "invertible 1x1 conv expects matching channel counts"
    s = h * w
    x3 = x.reshape(n, c, s)                   # pure view of NCHW, no data movement

    # Fold ActNorm into the conv (tiny C x C math, done once on the XLA side).
    w_eff = weight.astype(jnp.float32) * scale.astype(jnp.float32)[None, :]
    b_eff = (w_eff @ loc.astype(jnp.float32)).reshape(c_out, 1)

    nb, ts = _pick_blocks(n, c, s)
    grid = (n // nb, pl.cdiv(s, ts))          # spatial tail block masked, no asserts

    out3 = pl.pallas_call(
        _actnorm_invconv_kernel,
        out_shape=jax.ShapeDtypeStruct((n, c_out, s), x.dtype),
        grid_spec=pltpu.PrefetchScalarGridSpec(
            num_scalar_prefetch=0,
            grid=grid,
            in_specs=[
                # x: (NB, C, TS) block, spatial on lanes.
                pl.BlockSpec((nb, c, ts), lambda i, j: (i, 0, j)),
                # weight / bias: whole arrays, resident in VMEM (no blocking).
                pl.BlockSpec(memory_space=pltpu.MemorySpace.VMEM),
                pl.BlockSpec(memory_space=pltpu.MemorySpace.VMEM),
            ],
            out_specs=pl.BlockSpec((nb, c_out, ts), lambda i, j: (i, 0, j)),
        ),
        compiler_params=pltpu.CompilerParams(
            dimension_semantics=("parallel", "parallel"),
            vmem_limit_bytes=32 * 1024 * 1024,
        ),
    )(x3, w_eff, b_eff)

    return out3.reshape(n, c_out, h, w)


# ------------------- parameters (mirror the torch module init) --------------

def init_invconv_lu(key, channels):
    w = np.asarray(jax.random.normal(key, (channels, channels), dtype=jnp.float32))
    q, _ = np.linalg.qr(w)
    w_p, w_l, w_u = scipy_linalg.lu(q.astype(np.float32))
    w_s = np.diag(w_u).copy()
    w_u = np.triu(w_u, 1)
    u_mask = np.triu(np.ones_like(w_u), 1)
    l_mask = u_mask.T
    return dict(
        w_p=jnp.asarray(w_p),
        w_l=jnp.asarray(w_l),
        w_u=jnp.asarray(w_u),
        s_sign=jnp.asarray(np.sign(w_s)),
        logabs_w_s=jnp.asarray(np.log(np.abs(w_s))),
        u_mask=jnp.asarray(u_mask),
        l_mask=jnp.asarray(l_mask),
        l_eye=jnp.eye(channels, dtype=jnp.float32),
    )


def calc_lu_weight(p):
    return p["w_p"] @ (p["w_l"] * p["l_mask"] + p["l_eye"]) @ (
        p["w_u"] * p["u_mask"]
        + jnp.diag(p["s_sign"] * jnp.exp(p["logabs_w_s"]))
    )


def init_coupling(key, in_channel, filter_size):
    k0, k1 = jax.random.split(key)
    return dict(
        w0=0.05 * jax.random.normal(k0, (filter_size, in_channel // 2, 3, 3), jnp.float32),
        b0=jnp.zeros((filter_size,), jnp.float32),
        w1=0.05 * jax.random.normal(k1, (filter_size, filter_size, 1, 1), jnp.float32),
        b1=jnp.zeros((filter_size,), jnp.float32),
        # ZeroConv2d: zero weight / bias / scale, exactly like the torch module.
        w2=jnp.zeros((in_channel, filter_size, 3, 3), jnp.float32),
        b2=jnp.zeros((in_channel,), jnp.float32),
        zscale=jnp.zeros((1, in_channel, 1, 1), jnp.float32),
    )


def init_block_params(key, in_channel, n_flow, filter_size=64):
    squeeze_dim = in_channel * 4
    flows = []
    for _ in range(n_flow):
        key, k_inv, k_cpl = jax.random.split(key, 3)
        flows.append(dict(
            invconv=init_invconv_lu(k_inv, squeeze_dim),
            coupling=init_coupling(k_cpl, squeeze_dim, filter_size),
        ))
    return dict(flows=flows)


# --------------------------- Block forward ----------------------------------

def actnorm_data_init(x):
    # ActNorm data-dependent init on its first forward: loc=-mean, scale=1/(std+eps).
    mean = jnp.mean(x, axis=(0, 2, 3))
    std = jnp.std(x, axis=(0, 2, 3), ddof=1)   # torch.std is unbiased
    return -mean, 1.0 / (std + 1e-6)


def _conv_nchw(x, w, b, padding):
    out = jax.lax.conv_general_dilated(
        x, w, window_strides=(1, 1),
        padding=[(padding, padding), (padding, padding)],
        dimension_numbers=("NCHW", "OIHW", "NCHW"))
    return out + b[None, :, None, None]


# TODO(synk): the Coupling conv stack (3x3 conv -> ReLU -> 1x1 conv -> ReLU ->
# ZeroConv2d) is left to XLA via lax.conv; only the ActNorm+InvConv step is a
# hand-written Pallas kernel.
def coupling_forward(x, cp):
    in_a, in_b = jnp.split(x, 2, axis=1)
    h = jax.nn.relu(_conv_nchw(in_a, cp["w0"], cp["b0"], padding=1))
    h = jax.nn.relu(_conv_nchw(h, cp["w1"], cp["b1"], padding=0))
    h = jnp.pad(h, ((0, 0), (0, 0), (1, 1), (1, 1)), constant_values=1.0)
    z = _conv_nchw(h, cp["w2"], cp["b2"], padding=0)
    z = z * jnp.exp(cp["zscale"] * 3.0)
    log_s, t = jnp.split(z, 2, axis=1)
    s = jax.nn.sigmoid(log_s + 2.0)
    out_b = (in_b + t) * s
    return jnp.concatenate([in_a, out_b], axis=1)


def squeeze2x2(x):
    b, c, h, w = x.shape
    x = x.reshape(b, c, h // 2, 2, w // 2, 2)
    x = x.transpose(0, 1, 3, 5, 2, 4)
    return x.reshape(b, c * 4, h // 2, w // 2)


def flow_forward(x, fp, *, use_pallas=True):
    loc, scale = actnorm_data_init(x)
    weight = calc_lu_weight(fp["invconv"])
    if use_pallas:
        x = actnorm_invconv(x, loc, scale, weight)
    else:
        y = scale[None, :, None, None] * (x + loc[None, :, None, None])
        x = jnp.einsum("oi,nihw->nohw", weight, y)
    return coupling_forward(x, fp["coupling"])


def block_forward(x, params, *, split=True, use_pallas=True):
    out = squeeze2x2(x)
    for fp in params["flows"]:
        out = flow_forward(out, fp, use_pallas=use_pallas)
    if split:
        out, z_new = jnp.split(out, 2, axis=1)
    else:
        z_new = out
    return out, z_new


# ------------------------------- test ---------------------------------------

if __name__ == "__main__":
    key = jax.random.PRNGKey(0)
    k_x, k_p = jax.random.split(key)

    N, C, H, W = 2, 4, 16, 16
    n_flow = 2
    filter_size = 64    # torch default is 512; smaller here for a quick test

    x = jax.random.normal(k_x, (N, C, H, W), dtype=jnp.float32)
    params = init_block_params(k_p, C, n_flow, filter_size=filter_size)

    fwd = jax.jit(functools.partial(block_forward, split=True, use_pallas=True))
    out, z_new = jax.block_until_ready(fwd(x, params))

    out_ref, z_ref = block_forward(x, params, split=True, use_pallas=False)

    assert out.shape == (N, 2 * C, H // 2, W // 2)
    assert z_new.shape == (N, 2 * C, H // 2, W // 2)
    assert jnp.allclose(out, out_ref, atol=1e-4, rtol=1e-4)
    assert jnp.allclose(z_new, z_ref, atol=1e-4, rtol=1e-4)

    print("KERNEL_OK")
</pallas_src>

<mosaic_0001>
module attributes {stable_mosaic.version = 11 : i64} {
  func.func @_actnorm_invconv_kernel(%arg0: i32, %arg1: i32, %arg2: memref<2x16x64xf32, #tpu.memory_space<vmem>>, %arg3: memref<16x16xf32, #tpu.memory_space<vmem>>, %arg4: memref<16x1xf32, #tpu.memory_space<vmem>>, %arg5: memref<2x16x64xf32, #tpu.memory_space<vmem>>) attributes {dimension_semantics = [#tpu.dimension_semantics<parallel>, #tpu.dimension_semantics<parallel>], iteration_bounds = array<i64: 1, 1>, scalar_prefetch = 0 : i64, scratch_operands = 0 : i64, tpu.core_type = #tpu.core_type<tc>, window_params = [{transform_indices = @transform_0, window_bounds = array<i64: 2, 16, 64>}, {pipeline_mode = #tpu.pipeline_mode<synchronous>, transform_indices = @transform_1, window_bounds = array<i64: 16, 16>}, {pipeline_mode = #tpu.pipeline_mode<synchronous>, transform_indices = @transform_2, window_bounds = array<i64: 16, 1>}, {transform_indices = @transform_3, window_bounds = array<i64: 2, 16, 64>}]} {
    %c0 = arith.constant 0 : index
    %c0_0 = arith.constant 0 : index
    %0 = vector.load %arg3[%c0, %c0_0] : memref<16x16xf32, #tpu.memory_space<vmem>>, vector<16x16xf32>
    %c0_1 = arith.constant 0 : index
    %c0_2 = arith.constant 0 : index
    %1 = vector.load %arg4[%c0_1, %c0_2] : memref<16x1xf32, #tpu.memory_space<vmem>>, vector<16x1xf32>
    %c0_3 = arith.constant 0 : index
    %c0_4 = arith.constant 0 : index
    %c0_5 = arith.constant 0 : index
    %2 = vector.load %arg2[%c0_3, %c0_4, %c0_5] : memref<2x16x64xf32, #tpu.memory_space<vmem>>, vector<1x16x64xf32>
    %3 = vector.shape_cast %2 : vector<1x16x64xf32> to vector<16x64xf32>
    %cst = arith.constant dense<0.000000e+00> : vector<16x64xf32>
    %4 = tpu.matmul %0, %3, %cst {dimension_numbers = #tpu.dot_dimension_numbers<[1], [0], [0], [1], [0, 0, 1, 1], [], []>} : vector<16x16xf32>, vector<16x64xf32>, vector<16x64xf32> -> vector<16x64xf32>
    %5 = vector.broadcast %1 : vector<16x1xf32> to vector<16x64xf32>
    %6 = arith.addf %4, %5 : vector<16x64xf32>
    %c0_6 = arith.constant 0 : index
    %c0_7 = arith.constant 0 : index
    %c0_8 = arith.constant 0 : index
    %7 = vector.load %arg5[%c0_6, %c0_7, %c0_8] : memref<2x16x64xf32, #tpu.memory_space<vmem>>, vector<1x16x64xf32>
    %8 = vector.shape_cast %7 : vector<1x16x64xf32> to vector<16x64xf32>
    %9 = vector.shape_cast %6 : vector<16x64xf32> to vector<1x16x64xf32>
    tpu.vector_store %arg5[%c0_6, %c0_7, %c0_8], %9 {strides = array<i32>} : memref<2x16x64xf32, #tpu.memory_space<vmem>>, vector<1x16x64xf32>,
    %c1 = arith.constant 1 : index
    %c0_9 = arith.constant 0 : index
    %c0_10 = arith.constant 0 : index
    %10 = vector.load %arg2[%c1, %c0_9, %c0_10] : memref<2x16x64xf32, #tpu.memory_space<vmem>>, vector<1x16x64xf32>
    %11 = vector.shape_cast %10 : vector<1x16x64xf32> to vector<16x64xf32>
    %cst_11 = arith.constant dense<0.000000e+00> : vector<16x64xf32>
    %12 = tpu.matmul %0, %11, %cst_11 {dimension_numbers = #tpu.dot_dimension_numbers<[1], [0], [0], [1], [0, 0, 1, 1], [], []>} : vector<16x16xf32>, vector<16x64xf32>, vector<16x64xf32> -> vector<16x64xf32>
    %13 = vector.broadcast %1 : vector<16x1xf32> to vector<16x64xf32>
    %14 = arith.addf %12, %13 : vector<16x64xf32>
    %c1_12 = arith.constant 1 : index
    %c0_13 = arith.constant 0 : index
    %c0_14 = arith.constant 0 : index
    %15 = vector.load %arg5[%c1_12, %c0_13, %c0_14] : memref<2x16x64xf32, #tpu.memory_space<vmem>>, vector<1x16x64xf32>
    %16 = vector.shape_cast %15 : vector<1x16x64xf32> to vector<16x64xf32>
    %17 = vector.shape_cast %14 : vector<16x64xf32> to vector<1x16x64xf32>
    tpu.vector_store %arg5[%c1_12, %c0_13, %c0_14], %17 {strides = array<i32>} : memref<2x16x64xf32, #tpu.memory_space<vmem>>, vector<1x16x64xf32>,
    return
  }
  func.func @transform_0(%arg0: i32, %arg1: i32) -> (i32, i32, i32) {
    %c0_i32 = arith.constant 0 : i32
    %c0_i32_0 = arith.constant 0 : i32
    return %arg0, %c0_i32, %arg1 : i32, i32, i32
  }
  func.func @transform_1(%arg0: i32, %arg1: i32) -> (i32, i32) {
    %c0_i32 = arith.constant 0 : i32
    %c0_i32_0 = arith.constant 0 : i32
    %c0_i32_1 = arith.constant 0 : i32
    return %c0_i32, %c0_i32_0 : i32, i32
  }
  func.func @transform_2(%arg0: i32, %arg1: i32) -> (i32, i32) {
    %c0_i32 = arith.constant 0 : i32
    %c0_i32_0 = arith.constant 0 : i32
    %c0_i32_1 = arith.constant 0 : i32
    return %c0_i32, %c0_i32_0 : i32, i32
  }
  func.func @transform_3(%arg0: i32, %arg1: i32) -> (i32, i32, i32) {
    %c0_i32 = arith.constant 0 : i32
    %c0_i32_0 = arith.constant 0 : i32
    return %arg0, %c0_i32, %arg1 : i32, i32, i32
  }
}

</mosaic_0001>

<bundles_post_ra>
// kernel: block_forward.2
= control target key start
LH: loop header
LB: loop body
LE: loop exit
PB: predicated region body
PF: predicated region fallthrough
CT: control target
= control target key end

     0   :  { %v232_v3 = vmov 0   ;;  %vm30_vm0 = vcmask 130048   ;;  %vm112_vm1 = vcmask 523264   ;;  %s289_s0 = inlined_call_operand.vmem [shape: f32[2,16,64], index: 0, kind: input, shape index: {}]   ;;  %s290_s1 = inlined_call_operand.vmem [shape: f32[16,16], index: 1, kind: input, shape index: {}]   ;;  %s291_s2 = inlined_call_operand.vmem [shape: f32[16,1], index: 2, kind: input, shape index: {}]   ;;  %s292_s3 = inlined_call_operand.vmem [shape: f32[2,16,64], index: 3, kind: output, shape index: {}]  }
   0x1   :  { %v19_v0 = vld [vmem:[%s289_s0 + $0x8] sm:$0xff]  ;;  %v203_v1 = vld [vmem:[%s289_s0 + $0x18] sm:$0xff]  ;;  %v18_v2 = vld [vmem:[%s289_s0] sm:$0xff]  ;;  %231 = vset.pattern.permute.xlu0 %v232_v3 }
   0x2   :  { %216 = vmatprep.subr.mxu0 %v19_v0  ;;  %223 = vmatprep.subr.mxu1 %v203_v1  ;;  %v202_v4 = vld [vmem:[%s289_s0 + $0x10] sm:$0xff]  ;;  %v14_v5 = vld [vmem:[%s290_s1] sm:$0xff]  ;;  %v15_v6 = vld [vmem:[%s290_s1 + $0x8] sm:$0xff] }
   0x3   :  { %217 = vmatpush3.msra.mxu0 %v19_v0  ;;  %224 = vmatpush3.msra.mxu1 %v203_v1  ;;  %v16_v7 = vld [vmem:[%s291_s2] sm:$0xff]  ;;  %v17_v8 = vld [vmem:[%s291_s2 + $0x8] sm:$0xff] }
   0x4   :  { %218 = vmatprep.subr.mxu0 %v18_v2  ;;  %225 = vmatprep.subr.mxu1 %v202_v4 }
   0x5   :  { %219 = vmatpush3.msra.mxu0 %v18_v2  ;;  %220 = vmatprep.mubr.msk.f32.mxu0 %vm30_vm0, %v14_v5 }
   0x6   :  { %226 = vmatpush3.msra.mxu1 %v202_v4  ;;  %227 = vmatprep.mubr.msk.f32.mxu1 %vm30_vm0, %v14_v5 }
   0x7   :  { %221 = vmatmul.mubr.msk.f32.vlgmr.msra.gmra.mxu0 %vm30_vm0, %v15_v6  ;;  %228 = vmatmul.mubr.msk.f32.vlgmr.msra.gmra.mxu1 %vm30_vm0, %v15_v6 }
   0x8   :  { %22 = vperm.xlu0 %231, %v16_v7  }
   0xc   :  { %27 = vperm.xlu0 %231, %v17_v8  }
  0x83   :  { %v23_v9 = vpop.permute.xlu0 %22 }
  0x87   :  { %v28_v10 = vpop.permute.xlu0 %27 }
  0xc7   :  { %v222_v11 = vpop.f32.mrf.mxu0  ;;  %v229_v12 = vpop.f32.mrf.mxu1 }
  0xc8   :  { %v109_v13 = vadd.f32 %v222_v11, %v28_v10  ;;  %v190_v14 = vadd.f32 %v229_v12, %v28_v10 }
  0xc9   :  { %v103_v15 = vpop.f32.mrf.mxu0  ;;  %v184_v16 = vpop.f32.mrf.mxu1 }
  0xca   :  { %114 = vst.msk [vmem:[%s292_s3 + $0x8] sm:$0xff] %vm112_vm1, %v109_v13  ;;  %207 = vst.msk [vmem:[%s292_s3 + $0x18] sm:$0xff] %vm112_vm1, %v190_v14  ;;  %v104_v17 = vadd.f32 %v103_v15, %v23_v9  ;;  %v185_v18 = vadd.f32 %v184_v16, %v23_v9 }
  0xcc   :  { %113 = vst.msk [vmem:[%s292_s3] sm:$0xff] %vm112_vm1, %v104_v17  ;;  %206 = vst.msk [vmem:[%s292_s3 + $0x10] sm:$0xff] %vm112_vm1, %v185_v18 }

</bundles_post_ra>
